<compile_context>
chip_gen: v5e
topology: v5e:2x2
jax: 0.10.0
libtpu: 0.0.40
codegen_flags: <defaults>
</compile_context>

<pallas_src>
import jax
import jax.numpy as jnp
import numpy as np
from jax.experimental import pallas as pl
from jax.experimental.pallas import tpu as pltpu


def _round_up(x, m):
    return ((x + m - 1) // m) * m


def _vmem_budget():
    """Generation-aware (per-step budget, vmem_limit_bytes)."""
    try:
        cap = int(pltpu.get_tpu_info().vmem_capacity_bytes)
    except Exception:
        cap = 64 << 20  # conservative (v7x-sized) fallback
    if cap >= (96 << 20):          # v5e / v6e: 128 MiB physical VMEM
        return 32 << 20, 48 << 20
    else:                          # v7x: 64 MiB per TensorCore
        return 20 << 20, 40 << 20


def _pick_tiles(B, N, F_in, F_out, F_out_p,
                a_itemsize, x_itemsize, out_itemsize, budget):
    """Choose (batch_tile, row_tile) respecting (8,128) rules & VMEM budget."""
    # Row-tile candidates: full N is always legal; otherwise multiples of 8
    # that divide N (largest first).
    cands = sorted(
        {N} | {t for t in (2048, 1024, 512, 256, 128, 64, 32, 16, 8)
               if t < N and N % t == 0},
        reverse=True)

    def step_bytes(bt, tm):
        a = 2 * bt * tm * N * a_itemsize            # A tile (double-buffered)
        o = 2 * bt * tm * F_out * out_itemsize      # out tile (double-buffered)
        x = 2 * bt * N * F_in * x_itemsize          # X (count both buffers)
        w = 2 * (F_in * F_out_p * 4 + F_out_p * 4)  # weight + bias
        xw = bt * N * F_out_p * 2                   # bf16 scratch (single)
        return a + o + x + w + xw

    # Largest row tile that fits the budget; fall back to the smallest.
    TM = cands[-1]
    for t in cands:
        if step_bytes(1, t) <= budget:
            TM = t
            break

    # Pack several small graphs per step (amortize ~0.35us/step, reuse W/XW),
    # keeping >= 2 grid points (v7x dual TC) and capping at 4 (bounded unroll).
    Bt = 1
    while (Bt < 4
           and B % (2 * Bt) == 0
           and (B // (2 * Bt)) * (N // TM) >= 2
           and step_bytes(2 * Bt, TM) <= budget):
        Bt *= 2

    # Guarantee >= 2 grid points when possible (v7x dual TensorCore).
    if (B // Bt) * (N // TM) < 2:
        for t in cands:
            if t < TM and (N // t) >= 2:
                TM = t
                break
    return Bt, TM


def gcn_kernel(a_ref, x_ref, w_ref, b_ref, o_ref, xw_ref):
    # a_ref : (Bt, TM, N)       input dtype  row tile of adjacency
    # x_ref : (Bt, N, F_in)     input dtype  node features (resident per batch tile)
    # w_ref : (F_in, F_out_p)   f32          pre-transposed, zero-padded weight
    # b_ref : (1, F_out_p)      f32          zero-padded bias
    # o_ref : (Bt, TM, F_out)   out dtype    unpadded output tile
    # xw_ref: (Bt, N, F_out_p)  bf16         scratch: X @ Wt for this batch tile
    bt = a_ref.shape[0]          # static, <= 4
    f_out = o_ref.shape[-1]      # static

    # Compute XW once per batch tile (row-tile axis is the inner, "arbitrary"
    # grid axis, so program_id(1) == 0 marks the first visit of a batch tile).
    @pl.when(pl.program_id(1) == 0)
    def _():
        w_bf = w_ref[...].astype(jnp.bfloat16)
        for t in range(bt):
            xw = jnp.dot(x_ref[t].astype(jnp.bfloat16), w_bf,
                         preferred_element_type=jnp.float32)
            xw_ref[t] = xw.astype(jnp.bfloat16)

    bias = b_ref[...]                                 # (1, F_out_p)
    for t in range(bt):
        h = jnp.dot(a_ref[t].astype(jnp.bfloat16), xw_ref[t],
                    preferred_element_type=jnp.float32)   # (TM, F_out_p)
        h = jnp.maximum(h + bias, 0.0)
        o_ref[t] = h[:, :f_out].astype(o_ref.dtype)


def gcn_forward(A, X, W, b):
    B, N, N2 = A.shape
    assert N == N2
    F_in = X.shape[-1]
    F_out = W.shape[0]
    out_dtype = X.dtype

    # Lane-padded weight / bias (tiny, one-time). Padded columns are exactly
    # zero so they never affect the real F_out outputs.
    F_out_p = _round_up(F_out, 128)
    Wt = jnp.zeros((F_in, F_out_p), jnp.float32).at[:, :F_out].set(
        jnp.asarray(W, jnp.float32).T)
    bp = jnp.zeros((1, F_out_p), jnp.float32).at[:, :F_out].set(
        jnp.asarray(b, jnp.float32).reshape(1, F_out))

    budget, vmem_limit = _vmem_budget()
    Bt, TM = _pick_tiles(B, N, F_in, F_out, F_out_p,
                         A.dtype.itemsize, X.dtype.itemsize,
                         jnp.dtype(out_dtype).itemsize, budget)
    grid = (B // Bt, N // TM)

    out = pl.pallas_call(
        gcn_kernel,
        out_shape=jax.ShapeDtypeStruct((B, N, F_out), out_dtype),
        grid_spec=pltpu.PrefetchScalarGridSpec(
            num_scalar_prefetch=0,
            grid=grid,
            in_specs=[
                # Row tile of A (the only per-step stream), native dtype.
                pl.BlockSpec((Bt, TM, N), lambda bi, ri: (bi, ri, 0)),
                # Full X for this batch tile (resident across row tiles).
                pl.BlockSpec((Bt, N, F_in), lambda bi, ri: (bi, 0, 0)),
                # Weight / bias resident across the whole grid.
                pl.BlockSpec((F_in, F_out_p), lambda bi, ri: (0, 0)),
                pl.BlockSpec((1, F_out_p), lambda bi, ri: (0, 0)),
            ],
            # Unpadded, lane-masked output store (write volume dominates for
            # small F_out; no extra wrapper slice pass).
            out_specs=pl.BlockSpec((Bt, TM, F_out), lambda bi, ri: (bi, ri, 0)),
            scratch_shapes=[pltpu.VMEM((Bt, N, F_out_p), jnp.bfloat16)],
        ),
        compiler_params=pltpu.CompilerParams(
            dimension_semantics=("parallel", "arbitrary"),
            vmem_limit_bytes=vmem_limit,
        ),
    )(A, X, Wt, bp)
    return out


def gcn_reference(A, X, W, b):
    h = jnp.einsum("bnm,bmf->bnf", A, X)
    h = jnp.einsum("bnf,of->bno", h, W) + b
    return jnp.maximum(h, 0.0)


def init_gcn_params(key, in_dim, out_dim):
    # Matches weights_init: glorot_uniform on the Linear weight
    # (torch weight shape (out_dim, in_dim) -> fan_in=out_dim, fan_out=in_dim),
    # bias zeroed.
    limit = np.sqrt(6.0 / (out_dim + in_dim))
    W = jax.random.uniform(key, (out_dim, in_dim), dtype=jnp.float32,
                           minval=-limit, maxval=limit)
    b = jnp.zeros((out_dim,), dtype=jnp.float32)
    return W, b


if __name__ == "__main__":
    B, N, in_dim, out_dim = 2, 16, 8, 32

    key = jax.random.PRNGKey(0)
    k_a, k_x, k_w = jax.random.split(key, 3)

    A = jax.random.uniform(k_a, (B, N, N), dtype=jnp.float32)
    X = jax.random.normal(k_x, (B, N, in_dim), dtype=jnp.float32)
    W, b = init_gcn_params(k_w, in_dim, out_dim)

    out = gcn_forward(A, X, W, b)
    jax.block_until_ready(out)

    ref = gcn_reference(A, X, W, b)
    # bf16 matmul inputs with f32 accumulation -> loosened tolerance vs f32 ref.
    np.testing.assert_allclose(np.asarray(out), np.asarray(ref),
                               rtol=5e-2, atol=5e-2)

    print("KERNEL_OK")
</pallas_src>

<mosaic_0001>
module attributes {stable_mosaic.version = 11 : i64} {
  func.func @gcn_kernel(%arg0: i32, %arg1: i32, %arg2: memref<1x16x16xf32, #tpu.memory_space<vmem>>, %arg3: memref<1x16x8xf32, #tpu.memory_space<vmem>>, %arg4: memref<8x128xf32, #tpu.memory_space<vmem>>, %arg5: memref<1x128xf32, #tpu.memory_space<vmem>>, %arg6: memref<1x16x32xf32, #tpu.memory_space<vmem>>, %arg7: memref<1x16x128xbf16, #tpu.memory_space<vmem>>) attributes {dimension_semantics = [#tpu.dimension_semantics<parallel>, #tpu.dimension_semantics<arbitrary>], iteration_bounds = array<i64: 2, 1>, scalar_prefetch = 0 : i64, scratch_operands = 1 : i64, tpu.core_type = #tpu.core_type<tc>, window_params = [{transform_indices = @transform_0, window_bounds = array<i64: 1, 16, 16>}, {transform_indices = @transform_1, window_bounds = array<i64: 1, 16, 8>}, {pipeline_mode = #tpu.pipeline_mode<synchronous>, transform_indices = @transform_2, window_bounds = array<i64: 8, 128>}, {pipeline_mode = #tpu.pipeline_mode<synchronous>, transform_indices = @transform_3, window_bounds = array<i64: 1, 128>}, {transform_indices = @transform_4, window_bounds = array<i64: 1, 16, 32>}]} {
    %c0_i32 = arith.constant 0 : i32
    %0 = arith.cmpi eq, %arg1, %c0_i32 : i32
    %1 = arith.extui %0 : i1 to i32
    %c0_i32_0 = arith.constant 0 : i32
    %2 = arith.cmpi ne, %1, %c0_i32_0 : i32
    scf.if %2 {
      %c0_12 = arith.constant 0 : index
      %c0_13 = arith.constant 0 : index
      %18 = vector.load %arg4[%c0_12, %c0_13] : memref<8x128xf32, #tpu.memory_space<vmem>>, vector<8x128xf32>
      %19 = arith.truncf %18 : vector<8x128xf32> to vector<8x128xbf16>
      %c0_14 = arith.constant 0 : index
      %c0_15 = arith.constant 0 : index
      %c0_16 = arith.constant 0 : index
      %20 = vector.load %arg3[%c0_14, %c0_15, %c0_16] : memref<1x16x8xf32, #tpu.memory_space<vmem>>, vector<1x16x8xf32>
      %21 = vector.shape_cast %20 : vector<1x16x8xf32> to vector<16x8xf32>
      %22 = arith.truncf %21 : vector<16x8xf32> to vector<16x8xbf16>
      %cst_17 = arith.constant dense<0.000000e+00> : vector<16x128xf32>
      %23 = tpu.matmul %22, %19, %cst_17 {dimension_numbers = #tpu.dot_dimension_numbers<[1], [0], [0], [1], [0, 0, 1, 1], [], []>} : vector<16x8xbf16>, vector<8x128xbf16>, vector<16x128xf32> -> vector<16x128xf32>
      %24 = arith.truncf %23 : vector<16x128xf32> to vector<16x128xbf16>
      %c0_18 = arith.constant 0 : index
      %c0_19 = arith.constant 0 : index
      %c0_20 = arith.constant 0 : index
      %25 = vector.load %arg7[%c0_18, %c0_19, %c0_20] : memref<1x16x128xbf16, #tpu.memory_space<vmem>>, vector<1x16x128xbf16>
      %26 = vector.shape_cast %25 : vector<1x16x128xbf16> to vector<16x128xbf16>
      %27 = vector.shape_cast %24 : vector<16x128xbf16> to vector<1x16x128xbf16>
      tpu.vector_store %arg7[%c0_18, %c0_19, %c0_20], %27 {strides = array<i32>} : memref<1x16x128xbf16, #tpu.memory_space<vmem>>, vector<1x16x128xbf16>,
    } else {
    }
    %c0 = arith.constant 0 : index
    %c0_1 = arith.constant 0 : index
    %3 = vector.load %arg5[%c0, %c0_1] : memref<1x128xf32, #tpu.memory_space<vmem>>, vector<1x128xf32>
    %c0_2 = arith.constant 0 : index
    %c0_3 = arith.constant 0 : index
    %c0_4 = arith.constant 0 : index
    %4 = vector.load %arg2[%c0_2, %c0_3, %c0_4] : memref<1x16x16xf32, #tpu.memory_space<vmem>>, vector<1x16x16xf32>
    %5 = vector.shape_cast %4 : vector<1x16x16xf32> to vector<16x16xf32>
    %6 = arith.truncf %5 : vector<16x16xf32> to vector<16x16xbf16>
    %c0_5 = arith.constant 0 : index
    %c0_6 = arith.constant 0 : index
    %c0_7 = arith.constant 0 : index
    %7 = vector.load %arg7[%c0_5, %c0_6, %c0_7] : memref<1x16x128xbf16, #tpu.memory_space<vmem>>, vector<1x16x128xbf16>
    %8 = vector.shape_cast %7 : vector<1x16x128xbf16> to vector<16x128xbf16>
    %cst = arith.constant dense<0.000000e+00> : vector<16x128xf32>
    %9 = tpu.matmul %6, %8, %cst {dimension_numbers = #tpu.dot_dimension_numbers<[1], [0], [0], [1], [0, 0, 1, 1], [], []>} : vector<16x16xbf16>, vector<16x128xbf16>, vector<16x128xf32> -> vector<16x128xf32>
    %10 = vector.broadcast %3 : vector<1x128xf32> to vector<16x128xf32>
    %11 = arith.addf %9, %10 : vector<16x128xf32>
    %cst_8 = arith.constant 0.000000e+00 : f32
    %12 = vector.broadcast %cst_8 : f32 to vector<16x128xf32>
    %13 = arith.maximumf %11, %12 : vector<16x128xf32>
    %14 = vector.extract_strided_slice %13 {offsets = [0, 0], sizes = [16, 32], strides = [1, 1]} : vector<16x128xf32> to vector<16x32xf32>
    %c0_9 = arith.constant 0 : index
    %c0_10 = arith.constant 0 : index
    %c0_11 = arith.constant 0 : index
    %15 = vector.load %arg6[%c0_9, %c0_10, %c0_11] : memref<1x16x32xf32, #tpu.memory_space<vmem>>, vector<1x16x32xf32>
    %16 = vector.shape_cast %15 : vector<1x16x32xf32> to vector<16x32xf32>
    %17 = vector.shape_cast %14 : vector<16x32xf32> to vector<1x16x32xf32>
    tpu.vector_store %arg6[%c0_9, %c0_10, %c0_11], %17 {strides = array<i32>} : memref<1x16x32xf32, #tpu.memory_space<vmem>>, vector<1x16x32xf32>,
    return
  }
  func.func @transform_0(%arg0: i32, %arg1: i32) -> (i32, i32, i32) {
    %c0_i32 = arith.constant 0 : i32
    %c0_i32_0 = arith.constant 0 : i32
    return %arg0, %arg1, %c0_i32 : i32, i32, i32
  }
  func.func @transform_1(%arg0: i32, %arg1: i32) -> (i32, i32, i32) {
    %c0_i32 = arith.constant 0 : i32
    %c0_i32_0 = arith.constant 0 : i32
    %c0_i32_1 = arith.constant 0 : i32
    return %arg0, %c0_i32, %c0_i32_0 : i32, i32, i32
  }
  func.func @transform_2(%arg0: i32, %arg1: i32) -> (i32, i32) {
    %c0_i32 = arith.constant 0 : i32
    %c0_i32_0 = arith.constant 0 : i32
    %c0_i32_1 = arith.constant 0 : i32
    return %c0_i32, %c0_i32_0 : i32, i32
  }
  func.func @transform_3(%arg0: i32, %arg1: i32) -> (i32, i32) {
    %c0_i32 = arith.constant 0 : i32
    %c0_i32_0 = arith.constant 0 : i32
    %c0_i32_1 = arith.constant 0 : i32
    return %c0_i32, %c0_i32_0 : i32, i32
  }
  func.func @transform_4(%arg0: i32, %arg1: i32) -> (i32, i32, i32) {
    %c0_i32 = arith.constant 0 : i32
    %c0_i32_0 = arith.constant 0 : i32
    return %arg0, %arg1, %c0_i32 : i32, i32, i32
  }
}

</mosaic_0001>

<bundles_post_ra>
// kernel: tpu_custom_call.1
= control target key start
LH: loop header
LB: loop body
LE: loop exit
PB: predicated region body
PF: predicated region fallthrough
CT: control target
= control target key end

     0   :  { %9 = vsyncpa [#allocation4], 0  ;;  %s731_s0 = inlined_call_operand.vmem [shape: f32[2,16,16], index: 0, kind: input, shape index: {}]   ;;  %s732_s1 = inlined_call_operand.vmem [shape: f32[2,16,8], index: 1, kind: input, shape index: {}]   ;;  %s733_s2 = inlined_call_operand.vmem [shape: f32[8,128], index: 2, kind: input, shape index: {}]   ;;  %s734_s3 = inlined_call_operand.vmem [shape: f32[1,128], index: 3, kind: input, shape index: {}]   ;;  %s735_s4 = inlined_call_operand.hbm [shape: f32[2,16,32], index: 4, kind: output, shape index: {}]  }
   0x1   :  { %11 = vsyncpa [#allocation4 + $0x1], 0  ;;  %s625_s15 = smov 0   ;;  %s627_s16 = smov 0  }
   0x2   :  { %s629_s17 = smov 0   ;;  %s631_s18 = smov 0  }
   0x3   :  { %s633_s19 = smov 0   ;;  %s635_s20 = smov 0  }
   0x4 LB: > { %s430_s21 = sadd.s32 4294967295, %s596_s20   ;;  %s431_s22 = sadd.s32 4294967294, %s596_s20   ;;  %s596_s20 = sphi %s635_s20, %s17_s20   ;;  %s592_s19 = sphi %s633_s19, %s742_s19   ;;  %s588_s18 = sphi %s631_s18, %s741_s18   ;;  %s584_s17 = sphi %s629_s17, %s740_s17   ;;  %s580_s16 = sphi %s627_s16, %s739_s16   ;;  %s576_s15 = sphi %s625_s15, %s738_s15  }
   0x5   : > { %s29_s23 = sadd.s32 1, %s592_s19  ;;  %s134_s24 = sadd.s32 1, %s584_s17 }
   0x6   : > { %p31_p0 = scmp.ge.s32.totalorder %s29_s23, 2  ;;  %p144_p1 = scmp.ne.s32.totalorder %s584_s17, %s580_s16 }
   0x7   : > { %p145_p2 = scmp.eq.s32.totalorder %s430_s21, 1  ;;  %p150_p3 = scmp.ne.s32.totalorder %s580_s16, %s576_s15 }
   0x8   : > { %s744_s23 = smov (%p31_p0, %s29_s23), 0  ;;  %p151_p5 = scmp.eq.s32.totalorder %s431_s22, 1 }
   0x9   : > { %p665_p4 = por %p145_p2, %p144_p1  ;;  %s129_s26 = ssub.s32 %s592_s19, %s744_s23 }
   0xa   : > { %p434_p6 = scmp.ge.s32.totalorder %s596_s20, 1  ;;  %p132_p7 = scmp.eq.s32.totalorder %s129_s26, 0 }
   0xb   : > { %p672_p8 = por %p151_p5, %p150_p3  ;;  %p196_p9 = scmp.lt.s32.totalorder %s596_s20, 3 }
   0xc   : > { %s678_s28 = scalar_select %p132_p7, %s584_s17, %s134_s24  }
   0xd   : > { %p197_p10 = pnand %p434_p6, %p196_p9 }
   0xe   : > { %p232_p11 = scmp.lt.s32.totalorder (!%p197_p10), %s588_s18, 1  ;;  %s228_s13 = sand.u32 (!%p197_p10), 1, %s580_s16  }
   0xf   : > { %200 = sbr.rel (%p197_p10) target bundleno = 316 (0x13c), region = 36  ;;  %s435_s22 = sshll.u32 (!%p197_p10), %s228_s13, 4 }
  0x10   : > { %s454_s24 = sshll.u32 (!%p197_p10), %s588_s18, 4  ;;  %s322_s8 = scalar_lea.sflag (!%p197_p10), [#allocation4], %s228_s13 }
  0x11   : > { %s335_s30 = scalar_lea.hbm (!%p197_p10), %s735_s4, %s454_s24 }
  0x12   : > { %s338_s7 = sshll.u32 (!%p197_p10), %s335_s30, 4  ;;  %s339_s7 = int_to_ptr.hbm [resolvable:$true] %s338_s7 }
  0x14   : > { %v252_v0 = vld [vmem:[%s733_s2] sm:$0xff]  ;;  %vm261_vm0 = vcmask 1043456   ;;  %s233_s5 = scalar_select %p232_p11, %s588_s18, 1  ;;  %vm257_vm1 = vcmask 64512   ;;  %vm298_vm2 = vcmask 130048   ;;  %vm318_vm3 = vcmask 261120  }
  0x15   : > { %v253_v1 = vpack.c.bf16 %v252_v0, %v252_v0  ;;  %v517_v13 = vld [vmem:[%s734_s3] ss:$0 sm:$0xff] }
  0x16   : > { %s451_s6 = sshll.u32 %s233_s5, 4  ;;  %s230_s5 = scalar_lea.vmem [#allocation3], %s435_s22 }
  0x17   : > { %v263_v2 = vsel %vm261_vm0, %v253_v1, 0  ;;  %s245_s9 = scalar_lea.vmem %s732_s1, %s451_s6  ;;  %s239_s12 = scalar_lea.vmem %s731_s0, %s451_s6 }
  0x18   : > { %272 = vmatpush.bf16.msra.mxu0 %v263_v2  ;;  %v254_v3 = vld [vmem:[%s245_s9] sm:$0xff]  ;;  %v255_v4 = vld [vmem:[%s245_s9 + $0x8] sm:$0xff]  ;;  %s336_s6 = sshll.u32 %s230_s5, 4  ;;  %s532_s9 = sshra.s32 %s339_s7, 4  ;;  %s337_s6 = int_to_ptr.vmem [resolvable:$true] %s336_s6  ;;  %s533_s9 = int_to_ptr.hbm [resolvable:$true] %s532_s9 }
  0x19   : > { %v256_v5 = vpack.c.bf16 %v255_v4, %v254_v3  ;;  %v284_v9 = vld [vmem:[%s239_s12] sm:$0xff]  ;;  %v285_v10 = vld [vmem:[%s239_s12 + $0x8] sm:$0xff]  ;;  %s534_s18 = scalar_lea.hbm %s533_s9, 16  ;;  %s538_s12 = scalar_lea.hbm %s735_s4, 32 }
  0x1a   : > { %v286_v12 = vpack.c.bf16 %v285_v10, %v284_v9  ;;  %p535_p12 = scmp.ne.s32.totalorder %s533_s9, %s534_s18  ;;  %p539_p1 = scmp.lt.s32.totalorder %s533_s9, %s735_s4 }
  0x1b   : > { %440 = vmatmul.msk.bf16.vlgmr.msra.gmra.mxu0 %vm257_vm1, %v256_v5  ;;  %p540_p2 = scmp.lt.s32.totalorder %s538_s12, %s534_s18 }
  0x1c   : > { %p536_p13 = pnand %p535_p12, %p665_p4 }
  0x1d   : > { %p541_p3 = por %p540_p2, %p539_p1 }
  0x1e   : > { %p537_p0 = pneg %p536_p13 }
  0x20   : > { %p542_p5 = pnand %p541_p3, %p537_p0 }
  0x98   : > { %v274_v6 = vpop.f32.mrf.mxu0 }
  0xa0   : > { %v276_v7 = vpop.f32.mrf.mxu0 }
  0xa1   : > { %v458_v8 = vpack.c.bf16 %v276_v7, %v274_v6 }
  0xa3   : > { %459 = vst [vmem:[#allocation2] sm:$0xff] %v458_v8  }
  0xaa   : > { %v453_v11 = vld [vmem:[#allocation2] sm:$0xff] }
  0xab   : > { %309 = vmatpush.bf16.msra.mxu1 %v453_v11 }
  0xae   : > { %445 = vmatmul.msk.bf16.vlgmr.msra.gmra.mxu1 %vm298_vm2, %v286_v12 }
 0x12b   : > { %v311_v14 = vpop.f32.mrf.mxu1 }
 0x12c   : > { %v312_v15 = vadd.f32 %v517_v13, %v311_v14 }
 0x12e   : > { %v316_v16 = vmax.f32 %v312_v15, 0.0 }
 0x130   : > { %319 = vst.msk [vmem:[%s230_s5] sm:$0xff] %vm318_vm3, %v316_v16 }
 0x133   : > { %v313_v17 = vpop.f32.mrf.mxu1 }
 0x134   : > { %v314_v18 = vadd.f32 %v517_v13, %v313_v17 }
 0x136   : > { %v317_v19 = vmax.f32 %v314_v18, 0.0 }
 0x138   : > { %320 = vst.msk [vmem:[%s230_s5 + $0x8] sm:$0xff] %vm318_vm3, %v317_v19 }
 0x139   : > { %545 = shalt.err (!%p542_p5)
}
 0x13a   : > { %s598_s13 = smov 128   ;;  %s599_s22 = smov 8  }
 0x13b   : > { %460 = dma.vmem_to_hbm [thread:$0]  (%p665_p4), %s337_s6, 256, %s339_s7, %s322_s8, %s598_s13, %s598_s13, %s599_s22  }
 0x13c PF: > { %p466_p6 = scmp.ge.s32.totalorder %s596_s20, 2  ;;  %s353_s24 = sand.u32 1, %s576_s15  }
 0x13d   : > { %s354_s26 = scalar_lea.sflag [#allocation4], %s353_s24 }
 0x13e   : > { %p463_p7 = pnand %p466_p6, %p672_p8 }
 0x140   : > { %p464_p9 = pneg %p463_p7 }
 0x142   : > { %571 = dma.done.wait (%p464_p9), %s354_s26, 256  }
 0x143   : > { %573 = vsyncadd (%p464_p9), %s354_s26, 4294967040  ;;  %s17_s20 = sadd.s32 1, %s596_s20   ;;  %s738_s15 = smov %s580_s16 }
 0x144   : > { %p14_p10 = scmp.ge.s32.totalorder %s17_s20, 4   ;;  %s739_s16 = smov %s584_s17 }
 0x145   : > { %s740_s17 = smov %s678_s28  ;;  %s741_s18 = smov %s592_s19 }
 0x146   : > { %s742_s19 = smov %s744_s23  ;;  %16 = sbr.rel (!%p14_p10) target bundleno = 4 (0x4), region = 78 }
 0x14b   :  { %360 = vsyncpa [#allocation4], 1 }
 0x14c   :  { %362 = vsyncpa [#allocation4 + $0x1], 1 }

</bundles_post_ra>
